<compile_context>
chip_gen: v6e
topology: v6e:2x2x1
jax: 0.10.0
libtpu: 0.0.40
codegen_flags: <defaults>
</compile_context>

<pallas_src>
import functools

import jax
import jax.numpy as jnp
import numpy as np
from jax.experimental import pallas as pl
from jax.experimental.pallas import tpu as pltpu

EPS = 1e-5

_VMEM_LIMIT = None


def _round_up(x, m):
    return (x + m - 1) // m * m


def _vmem_limit_bytes():
    # Explicit scoped-VMEM limit (review): ~75% of physical, capped so the same
    # setting fits v5e/v6e (128 MiB) and v7x (64 MiB).
    try:
        cap = pltpu.get_tpu_info().vmem_capacity_bytes
        return min(int(cap) * 3 // 4, 112 * 1024 * 1024)
    except Exception:
        return 48 * 1024 * 1024


def _compiler_params():
    global _VMEM_LIMIT
    if _VMEM_LIMIT is None:
        _VMEM_LIMIT = _vmem_limit_bytes()
    return pltpu.CompilerParams(dimension_semantics=("parallel",),
                                vmem_limit_bytes=_VMEM_LIMIT)


# ----------------------------- in-kernel helpers -----------------------------

def _shift_down(x):
    """Row t <- x[t-1]; row 0 <- 0 (left 'same' zero pad). XLU roll + mask."""
    rolled = pltpu.roll(x, 1, axis=0)
    row = jax.lax.broadcasted_iota(jnp.int32, x.shape, 0)
    return jnp.where(row == 0, 0.0, rolled)


def _shift_up(x):
    """Row t <- x[t+1]; row L-1 <- 0 (right 'same' zero pad)."""
    n = x.shape[0]
    rolled = pltpu.roll(x, n - 1, axis=0)   # roll by L-1 == roll by -1
    row = jax.lax.broadcasted_iota(jnp.int32, x.shape, 0)
    return jnp.where(row == n - 1, 0.0, rolled)


# ----------------------------- kernel bodies -----------------------------

def _linear_stats_kernel(x_ref, w_ref, b_ref, o_ref, s_ref, q_ref, *,
                         total_rows, tile_rows):
    """1x1 conv (tokens layout) + per-tile sum / sum-of-squares for BN1 stats."""
    y = (jnp.dot(x_ref[...].astype(w_ref.dtype), w_ref[...],
                 preferred_element_type=jnp.float32) + b_ref[...])
    o_ref[...] = y.astype(o_ref.dtype)
    if total_rows % tile_rows:          # mask padded rows of the last tile
        row = (pl.program_id(0) * tile_rows
               + jax.lax.broadcasted_iota(jnp.int32, y.shape, 0))
        y = jnp.where(row < total_rows, y, 0.0)
    s_ref[0] = jnp.sum(y, axis=0, keepdims=True)
    q_ref[0] = jnp.sum(y * y, axis=0, keepdims=True)


def _bn_relu_conv3_concat_eo_kernel(aeo_ref, y_ref, sa_ref, ta_ref, sb_ref, tb_ref,
                                    wa_ref, wb_ref, bias_ref,
                                    heo_ref, sum_ref, ssq_ref):
    """conv3(concat([BN+ReLU(x2), BN+ReLU(up2(y))])) in even/odd token space.

    a (skip branch) arrives de-interleaved as (even, odd) half-length planes;
    the up-branch arrives at half length and its x2-nearest upsample is folded
    into the conv taps (wb = [w0, w1+w2, w0+w1, w2]).  Emits per-sample
    sum / sum-of-squares of the output so BN2 never re-reads it from HBM.
    """
    mm = wa_ref.dtype
    sa, ta = sa_ref[...], ta_ref[...]
    sb, tb = sb_ref[...], tb_ref[...]
    a_e = jnp.maximum(aeo_ref[0, 0].astype(jnp.float32) * sa + ta, 0.0)
    a_o = jnp.maximum(aeo_ref[0, 1].astype(jnp.float32) * sa + ta, 0.0)
    b = jnp.maximum(y_ref[0].astype(jnp.float32) * sb + tb, 0.0)

    a_o_m1 = _shift_down(a_o)   # a[2t-1]
    a_e_p1 = _shift_up(a_e)     # a[2t+2]
    b_m1 = _shift_down(b)       # y[t-1]
    b_p1 = _shift_up(b)         # y[t+1]

    bias = bias_ref[...]
    mm_dot = lambda x, w: jnp.dot(x.astype(mm), w, preferred_element_type=jnp.float32)

    h_e = (mm_dot(a_o_m1, wa_ref[0]) + mm_dot(a_e, wa_ref[1]) + mm_dot(a_o, wa_ref[2])
           + mm_dot(b_m1, wb_ref[0]) + mm_dot(b, wb_ref[1]) + bias)
    h_o = (mm_dot(a_e, wa_ref[0]) + mm_dot(a_o, wa_ref[1]) + mm_dot(a_e_p1, wa_ref[2])
           + mm_dot(b, wb_ref[2]) + mm_dot(b_p1, wb_ref[3]) + bias)

    heo_ref[0, 0] = h_e.astype(heo_ref.dtype)
    heo_ref[0, 1] = h_o.astype(heo_ref.dtype)
    sum_ref[0] = (jnp.sum(h_e, axis=0, keepdims=True)
                  + jnp.sum(h_o, axis=0, keepdims=True))
    ssq_ref[0] = (jnp.sum(h_e * h_e, axis=0, keepdims=True)
                  + jnp.sum(h_o * h_o, axis=0, keepdims=True))


def _bn_relu_conv3_residual_eo_kernel(heo_ref, s_ref, t_ref, w_ref, bias_ref, oeo_ref):
    """conv3(BN+ReLU(h)) in even/odd space with the residual 1x1 conv pre-folded
    into the weights/bias (w' = w_c2 @ (I + w_res))."""
    mm = w_ref.dtype
    s, t = s_ref[...], t_ref[...]
    g_e = jnp.maximum(heo_ref[0, 0].astype(jnp.float32) * s + t, 0.0)
    g_o = jnp.maximum(heo_ref[0, 1].astype(jnp.float32) * s + t, 0.0)
    g_o_m1 = _shift_down(g_o)
    g_e_p1 = _shift_up(g_e)

    bias = bias_ref[...]
    mm_dot = lambda x, w: jnp.dot(x.astype(mm), w, preferred_element_type=jnp.float32)
    o_e = mm_dot(g_o_m1, w_ref[0]) + mm_dot(g_e, w_ref[1]) + mm_dot(g_o, w_ref[2]) + bias
    o_o = mm_dot(g_e, w_ref[0]) + mm_dot(g_o, w_ref[1]) + mm_dot(g_e_p1, w_ref[2]) + bias
    oeo_ref[0, 0] = o_e.astype(oeo_ref.dtype)
    oeo_ref[0, 1] = o_o.astype(oeo_ref.dtype)


# ----------------------------- pallas wrappers -----------------------------

def pallas_linear_stats(x, w, b, *, out_dtype, tm=1024):
    """(M,K) @ (K,N) + b, row-tiled; also emits per-tile sum / sum-of-squares."""
    M, K = x.shape
    Nc = w.shape[1]
    tm = min(tm, _round_up(M, 8))
    g = pl.cdiv(M, tm)
    kern = functools.partial(_linear_stats_kernel, total_rows=M, tile_rows=tm)
    return pl.pallas_call(
        kern,
        out_shape=(jax.ShapeDtypeStruct((M, Nc), out_dtype),
                   jax.ShapeDtypeStruct((g, 1, Nc), jnp.float32),
                   jax.ShapeDtypeStruct((g, 1, Nc), jnp.float32)),
        grid=(g,),
        in_specs=[
            pl.BlockSpec((tm, K), lambda i: (i, 0)),
            pl.BlockSpec((K, Nc), lambda i: (0, 0)),
            pl.BlockSpec((1, Nc), lambda i: (0, 0)),
        ],
        out_specs=(
            pl.BlockSpec((tm, Nc), lambda i: (i, 0)),
            pl.BlockSpec((1, 1, Nc), lambda i: (i, 0, 0)),
            pl.BlockSpec((1, 1, Nc), lambda i: (i, 0, 0)),
        ),
        compiler_params=_compiler_params(),
    )(x, w, b.reshape(1, Nc))


def fused_bn_relu_conv3_concat(a_eo, y, sa, ta, sb, tb, w_a, w_b, bias):
    N, _, L, Ca = a_eo.shape
    Cb = y.shape[2]
    Co = w_a.shape[2]
    out_dtype = w_a.dtype   # h1 stored in the matmul dtype (bf16 in production)
    # TODO(synk): for very long sequences, add an L-tile grid axis with a 1-row
    # halo to bound per-sample VMEM on v7x (64 MiB); full-length per-sample
    # blocks are fine at these sizes and stay under vmem_limit_bytes.
    return pl.pallas_call(
        _bn_relu_conv3_concat_eo_kernel,
        out_shape=(jax.ShapeDtypeStruct((N, 2, L, Co), out_dtype),
                   jax.ShapeDtypeStruct((N, 1, Co), jnp.float32),
                   jax.ShapeDtypeStruct((N, 1, Co), jnp.float32)),
        grid=(N,),
        in_specs=[
            pl.BlockSpec((1, 2, L, Ca), lambda n: (n, 0, 0, 0)),
            pl.BlockSpec((1, L, Cb), lambda n: (n, 0, 0)),
            pl.BlockSpec((1, Ca), lambda n: (0, 0)),
            pl.BlockSpec((1, Ca), lambda n: (0, 0)),
            pl.BlockSpec((1, Cb), lambda n: (0, 0)),
            pl.BlockSpec((1, Cb), lambda n: (0, 0)),
            pl.BlockSpec((3, Ca, Co), lambda n: (0, 0, 0)),
            pl.BlockSpec((4, Cb, Co), lambda n: (0, 0, 0)),
            pl.BlockSpec((1, Co), lambda n: (0, 0)),
        ],
        out_specs=(
            pl.BlockSpec((1, 2, L, Co), lambda n: (n, 0, 0, 0)),
            pl.BlockSpec((1, 1, Co), lambda n: (n, 0, 0)),
            pl.BlockSpec((1, 1, Co), lambda n: (n, 0, 0)),
        ),
        compiler_params=_compiler_params(),
    )(a_eo, y, sa, ta, sb, tb, w_a, w_b, bias)


def fused_bn_relu_conv3_residual(h_eo, s, t, w3, bias):
    N, _, L, Ci = h_eo.shape
    Co = w3.shape[2]
    return pl.pallas_call(
        _bn_relu_conv3_residual_eo_kernel,
        out_shape=jax.ShapeDtypeStruct((N, 2, L, Co), jnp.float32),
        grid=(N,),
        in_specs=[
            pl.BlockSpec((1, 2, L, Ci), lambda n: (n, 0, 0, 0)),
            pl.BlockSpec((1, Ci), lambda n: (0, 0)),
            pl.BlockSpec((1, Ci), lambda n: (0, 0)),
            pl.BlockSpec((3, Ci, Co), lambda n: (0, 0, 0)),
            pl.BlockSpec((1, Co), lambda n: (0, 0)),
        ],
        out_specs=pl.BlockSpec((1, 2, L, Co), lambda n: (n, 0, 0, 0)),
        compiler_params=_compiler_params(),
    )(h_eo, s, t, w3, bias)


# ----------------------------- forward pass -----------------------------

def up_conv_forward(params, x1, x2, *, matmul_dtype=jnp.bfloat16):
    """x1: (N, C_in, L) upsample branch; x2: (N, C_in//2, 2L) skip branch."""
    N, C_in, L = x1.shape
    C_half = C_in // 2
    L2 = 2 * L
    f32 = jnp.float32
    hp = jax.lax.Precision.HIGHEST

    # ---- parameter prep (done once at load time in a real model) ----
    w_up = params["w_up"].T.astype(matmul_dtype)                    # (C_in, C_half)
    w_c1 = jnp.transpose(params["w_c1"], (2, 1, 0))                 # (3, C_in, C_out) f32
    C_out = w_c1.shape[2]
    w_a = w_c1[:, :C_half, :].astype(matmul_dtype)                  # skip (x2) channels
    wb = w_c1[:, C_half:, :]                                        # up-branch channels
    # nearest-x2 upsample folded into the up-branch conv taps (even/odd outputs).
    w_b = jnp.stack([wb[0], wb[1] + wb[2], wb[0] + wb[1], wb[2]], 0).astype(matmul_dtype)
    # residual 1x1 conv folded into conv #2:
    #   out = y + y@Wr + b_res == conv3(h; W2 @ (I+Wr)) + (b_c2 @ (I+Wr) + b_res)
    mix = jnp.eye(C_out, dtype=f32) + params["w_res"].T             # tokens layout
    w_c2 = jnp.transpose(params["w_c2"], (2, 1, 0))                 # (3, C_out, C_out)
    w_2f = jnp.einsum("kio,oj->kij", w_c2, mix, precision=hp).astype(matmul_dtype)
    b_2f = (jnp.dot(params["b_c2"], mix, precision=hp)
            + params["b_res"]).reshape(1, C_out)

    # ---- upsample branch: conv1x1(up2(x)) == up2(conv1x1(x)); run on the
    # pre-upsample tokens, emit BN1 partial stats from the same kernel ----
    x1t = jnp.transpose(x1, (0, 2, 1)).reshape(N * L, C_in)
    y, ys, yq = pallas_linear_stats(x1t, w_up, params["b_up"], out_dtype=matmul_dtype)
    y = y.reshape(N, L, C_half)

    # ---- skip branch de-interleaved into even/odd half-length planes (the
    # de-interleave rides the NCL->NLC transpose that is needed anyway) ----
    a_eo = jnp.transpose(x2.reshape(N, C_half, L, 2), (0, 3, 2, 1))  # (N, 2, L, C_half)

    # ---- BN1 batch statistics (training mode, biased variance) ----
    g1, bt1 = params["g1"], params["bt1"]
    mean_a = jnp.mean(x2, axis=(0, 2))
    var_a = jnp.var(x2, axis=(0, 2))
    cnt1 = N * L
    mean_b = jnp.sum(ys[:, 0, :], axis=0) / cnt1       # stats(y_up) == stats(y)
    var_b = jnp.sum(yq[:, 0, :], axis=0) / cnt1 - mean_b * mean_b
    sa = g1[:C_half] * jax.lax.rsqrt(var_a + EPS)
    ta = bt1[:C_half] - mean_a * sa
    sb = g1[C_half:] * jax.lax.rsqrt(var_b + EPS)
    tb = bt1[C_half:] - mean_b * sb

    # BN1+ReLU fused into conv3 #1 (concat + upsample folded); emits BN2 sums.
    h_eo, s1, s2 = fused_bn_relu_conv3_concat(
        a_eo, y,
        sa.reshape(1, C_half), ta.reshape(1, C_half),
        sb.reshape(1, C_half), tb.reshape(1, C_half),
        w_a, w_b, params["b_c1"].reshape(1, C_out))

    cnt2 = N * L2
    mean2 = jnp.sum(s1[:, 0, :], axis=0) / cnt2
    var2 = jnp.sum(s2[:, 0, :], axis=0) / cnt2 - mean2 * mean2
    sc2 = params["g2"] * jax.lax.rsqrt(var2 + EPS)
    sh2 = params["bt2"] - mean2 * sc2

    # BN2+ReLU fused into conv3 #2 with the residual pre-folded into the weights.
    out_eo = fused_bn_relu_conv3_residual(
        h_eo, sc2.reshape(1, C_out), sh2.reshape(1, C_out), w_2f, b_2f)

    # (N, 2, L, C_out) -> (N, C_out, 2L): the even/odd re-interleave rides the
    # NLC->NCL transpose that the module's output layout requires anyway.
    return jnp.transpose(out_eo, (0, 3, 2, 1)).reshape(N, C_out, L2)


# ----------------------------- pure-JAX reference -----------------------------

def _ref_conv1d(x, w, b, padding):
    y = jax.lax.conv_general_dilated(
        x, w, (1,), [(padding, padding)],
        dimension_numbers=("NCH", "OIH", "NCH"))
    return y + b[None, :, None]


def _ref_bn_relu(x, g, bt):
    mean = jnp.mean(x, axis=(0, 2), keepdims=True)
    var = jnp.mean((x - mean) ** 2, axis=(0, 2), keepdims=True)
    y = (x - mean) / jnp.sqrt(var + EPS) * g[None, :, None] + bt[None, :, None]
    return jnp.maximum(y, 0.0)


def ref_forward(params, x1, x2):
    x1u = jnp.repeat(x1, 2, axis=-1)
    x1c = _ref_conv1d(x1u, params["w_up"][:, :, None], params["b_up"], 0)
    x = jnp.concatenate([x2, x1c], axis=1)
    x = _ref_bn_relu(x, params["g1"], params["bt1"])
    x = _ref_conv1d(x, params["w_c1"], params["b_c1"], 1)
    x = _ref_bn_relu(x, params["g2"], params["bt2"])
    x = _ref_conv1d(x, params["w_c2"], params["b_c2"], 1)
    s = _ref_conv1d(x, params["w_res"][:, :, None], params["b_res"], 0)
    return x + s


# ----------------------------- main -----------------------------

def init_params(key, c_in, c_out):
    ks = jax.random.split(key, 10)
    f32 = jnp.float32
    return {
        "w_up":  0.1 * jax.random.normal(ks[0], (c_in // 2, c_in), f32),
        "b_up":  0.1 * jax.random.normal(ks[1], (c_in // 2,), f32),
        "g1":    1.0 + 0.1 * jax.random.normal(ks[2], (c_in,), f32),
        "bt1":   0.1 * jax.random.normal(ks[3], (c_in,), f32),
        "w_c1":  0.1 * jax.random.normal(ks[4], (c_out, c_in, 3), f32),
        "b_c1":  0.1 * jax.random.normal(ks[5], (c_out,), f32),
        "g2":    1.0 + 0.1 * jax.random.normal(ks[6], (c_out,), f32),
        "bt2":   0.1 * jax.random.normal(ks[7], (c_out,), f32),
        "w_c2":  0.1 * jax.random.normal(ks[8], (c_out, c_out, 3), f32),
        "b_c2":  jnp.zeros((c_out,), f32),
        "w_res": 0.1 * jax.random.normal(ks[9], (c_out, c_out), f32),
        "b_res": jnp.zeros((c_out,), f32),
    }


if __name__ == "__main__":
    key = jax.random.PRNGKey(0)
    k_p, k_x1, k_x2 = jax.random.split(key, 3)

    N, C_IN, C_OUT, L = 2, 8, 8, 8
    params = init_params(k_p, C_IN, C_OUT)

    x1 = jax.random.normal(k_x1, (N, C_IN, L), jnp.float32)           # upsample branch
    x2 = jax.random.normal(k_x2, (N, C_IN // 2, 2 * L), jnp.float32)  # skip branch

    ref = jax.block_until_ready(ref_forward(params, x1, x2))

    # f32 MXU path — strict correctness check against the reference.
    fwd_f32 = jax.jit(functools.partial(up_conv_forward, matmul_dtype=jnp.float32))
    out = jax.block_until_ready(fwd_f32(params, x1, x2))
    np.testing.assert_allclose(np.asarray(out), np.asarray(ref), rtol=5e-4, atol=5e-4)

    # Production default: bf16 MXU + bf16 intermediates (stats / accumulation in
    # f32) — looser sanity check.
    fwd_bf16 = jax.jit(up_conv_forward)
    out_bf16 = jax.block_until_ready(fwd_bf16(params, x1, x2))
    np.testing.assert_allclose(np.asarray(out_bf16), np.asarray(ref), rtol=5e-2, atol=5e-2)

    print("KERNEL_OK")
</pallas_src>

<mosaic_0001>
module attributes {stable_mosaic.version = 11 : i64} {
  func.func @_bn_relu_conv3_residual_eo_kernel(%arg0: i32, %arg1: memref<1x2x8x8xf32, #tpu.memory_space<vmem>>, %arg2: memref<1x8xf32, #tpu.memory_space<vmem>>, %arg3: memref<1x8xf32, #tpu.memory_space<vmem>>, %arg4: memref<3x8x8xf32, #tpu.memory_space<vmem>>, %arg5: memref<1x8xf32, #tpu.memory_space<vmem>>, %arg6: memref<1x2x8x8xf32, #tpu.memory_space<vmem>>) attributes {dimension_semantics = [#tpu.dimension_semantics<parallel>], iteration_bounds = array<i64: 2>, scalar_prefetch = 0 : i64, scratch_operands = 0 : i64, tpu.core_type = #tpu.core_type<tc>, window_params = [{transform_indices = @transform_0, window_bounds = array<i64: 1, 2, 8, 8>}, {pipeline_mode = #tpu.pipeline_mode<synchronous>, transform_indices = @transform_1, window_bounds = array<i64: 1, 8>}, {pipeline_mode = #tpu.pipeline_mode<synchronous>, transform_indices = @transform_2, window_bounds = array<i64: 1, 8>}, {pipeline_mode = #tpu.pipeline_mode<synchronous>, transform_indices = @transform_3, window_bounds = array<i64: 3, 8, 8>}, {pipeline_mode = #tpu.pipeline_mode<synchronous>, transform_indices = @transform_4, window_bounds = array<i64: 1, 8>}, {transform_indices = @transform_5, window_bounds = array<i64: 1, 2, 8, 8>}]} {
    %c0 = arith.constant 0 : index
    %c0_0 = arith.constant 0 : index
    %0 = vector.load %arg2[%c0, %c0_0] : memref<1x8xf32, #tpu.memory_space<vmem>>, vector<1x8xf32>
    %c0_1 = arith.constant 0 : index
    %c0_2 = arith.constant 0 : index
    %1 = vector.load %arg3[%c0_1, %c0_2] : memref<1x8xf32, #tpu.memory_space<vmem>>, vector<1x8xf32>
    %c0_3 = arith.constant 0 : index
    %c0_4 = arith.constant 0 : index
    %c0_5 = arith.constant 0 : index
    %c0_6 = arith.constant 0 : index
    %2 = vector.load %arg1[%c0_3, %c0_4, %c0_5, %c0_6] : memref<1x2x8x8xf32, #tpu.memory_space<vmem>>, vector<1x1x8x8xf32>
    %3 = vector.shape_cast %2 : vector<1x1x8x8xf32> to vector<8x8xf32>
    %4 = vector.broadcast %0 : vector<1x8xf32> to vector<8x8xf32>
    %5 = arith.mulf %3, %4 : vector<8x8xf32>
    %6 = vector.broadcast %1 : vector<1x8xf32> to vector<8x8xf32>
    %7 = arith.addf %5, %6 : vector<8x8xf32>
    %cst = arith.constant 0.000000e+00 : f32
    %8 = vector.broadcast %cst : f32 to vector<8x8xf32>
    %9 = arith.maximumf %7, %8 : vector<8x8xf32>
    %c0_7 = arith.constant 0 : index
    %c1 = arith.constant 1 : index
    %c0_8 = arith.constant 0 : index
    %c0_9 = arith.constant 0 : index
    %10 = vector.load %arg1[%c0_7, %c1, %c0_8, %c0_9] : memref<1x2x8x8xf32, #tpu.memory_space<vmem>>, vector<1x1x8x8xf32>
    %11 = vector.shape_cast %10 : vector<1x1x8x8xf32> to vector<8x8xf32>
    %12 = vector.broadcast %0 : vector<1x8xf32> to vector<8x8xf32>
    %13 = arith.mulf %11, %12 : vector<8x8xf32>
    %14 = vector.broadcast %1 : vector<1x8xf32> to vector<8x8xf32>
    %15 = arith.addf %13, %14 : vector<8x8xf32>
    %cst_10 = arith.constant 0.000000e+00 : f32
    %16 = vector.broadcast %cst_10 : f32 to vector<8x8xf32>
    %17 = arith.maximumf %15, %16 : vector<8x8xf32>
    %c1_i32 = arith.constant 1 : i32
    %18 = tpu.dynamic_rotate %17 by %c1_i32 dim 0 : vector<8x8xf32>, i32 -> vector<8x8xf32>
    %19 = tpu.iota {dimensions = array<i32: 0>} : vector<8x8xi32>
    %c0_i32 = arith.constant 0 : i32
    %20 = vector.broadcast %c0_i32 : i32 to vector<8x8xi32>
    %21 = arith.cmpi eq, %19, %20 : vector<8x8xi32>
    %cst_11 = arith.constant 0.000000e+00 : f32
    %22 = vector.broadcast %cst_11 : f32 to vector<8x8xf32>
    %23 = arith.select %21, %22, %18 : vector<8x8xi1>, vector<8x8xf32>
    %c7_i32 = arith.constant 7 : i32
    %24 = tpu.dynamic_rotate %9 by %c7_i32 dim 0 : vector<8x8xf32>, i32 -> vector<8x8xf32>
    %25 = tpu.iota {dimensions = array<i32: 0>} : vector<8x8xi32>
    %c7_i32_12 = arith.constant 7 : i32
    %26 = vector.broadcast %c7_i32_12 : i32 to vector<8x8xi32>
    %27 = arith.cmpi eq, %25, %26 : vector<8x8xi32>
    %cst_13 = arith.constant 0.000000e+00 : f32
    %28 = vector.broadcast %cst_13 : f32 to vector<8x8xf32>
    %29 = arith.select %27, %28, %24 : vector<8x8xi1>, vector<8x8xf32>
    %c0_14 = arith.constant 0 : index
    %c0_15 = arith.constant 0 : index
    %30 = vector.load %arg5[%c0_14, %c0_15] : memref<1x8xf32, #tpu.memory_space<vmem>>, vector<1x8xf32>
    %c0_16 = arith.constant 0 : index
    %c0_17 = arith.constant 0 : index
    %c0_18 = arith.constant 0 : index
    %31 = vector.load %arg4[%c0_16, %c0_17, %c0_18] : memref<3x8x8xf32, #tpu.memory_space<vmem>>, vector<1x8x8xf32>
    %32 = vector.shape_cast %31 : vector<1x8x8xf32> to vector<8x8xf32>
    %cst_19 = arith.constant dense<0.000000e+00> : vector<8x8xf32>
    %33 = tpu.matmul %23, %32, %cst_19 {dimension_numbers = #tpu.dot_dimension_numbers<[1], [0], [0], [1], [0, 0, 1, 1], [], []>} : vector<8x8xf32>, vector<8x8xf32>, vector<8x8xf32> -> vector<8x8xf32>
    %c1_20 = arith.constant 1 : index
    %c0_21 = arith.constant 0 : index
    %c0_22 = arith.constant 0 : index
    %34 = vector.load %arg4[%c1_20, %c0_21, %c0_22] : memref<3x8x8xf32, #tpu.memory_space<vmem>>, vector<1x8x8xf32>
    %35 = vector.shape_cast %34 : vector<1x8x8xf32> to vector<8x8xf32>
    %cst_23 = arith.constant dense<0.000000e+00> : vector<8x8xf32>
    %36 = tpu.matmul %9, %35, %cst_23 {dimension_numbers = #tpu.dot_dimension_numbers<[1], [0], [0], [1], [0, 0, 1, 1], [], []>} : vector<8x8xf32>, vector<8x8xf32>, vector<8x8xf32> -> vector<8x8xf32>
    %37 = arith.addf %33, %36 : vector<8x8xf32>
    %c2 = arith.constant 2 : index
    %c0_24 = arith.constant 0 : index
    %c0_25 = arith.constant 0 : index
    %38 = vector.load %arg4[%c2, %c0_24, %c0_25] : memref<3x8x8xf32, #tpu.memory_space<vmem>>, vector<1x8x8xf32>
    %39 = vector.shape_cast %38 : vector<1x8x8xf32> to vector<8x8xf32>
    %cst_26 = arith.constant dense<0.000000e+00> : vector<8x8xf32>
    %40 = tpu.matmul %17, %39, %cst_26 {dimension_numbers = #tpu.dot_dimension_numbers<[1], [0], [0], [1], [0, 0, 1, 1], [], []>} : vector<8x8xf32>, vector<8x8xf32>, vector<8x8xf32> -> vector<8x8xf32>
    %41 = arith.addf %37, %40 : vector<8x8xf32>
    %42 = vector.broadcast %30 : vector<1x8xf32> to vector<8x8xf32>
    %43 = arith.addf %41, %42 : vector<8x8xf32>
    %c0_27 = arith.constant 0 : index
    %c0_28 = arith.constant 0 : index
    %c0_29 = arith.constant 0 : index
    %44 = vector.load %arg4[%c0_27, %c0_28, %c0_29] : memref<3x8x8xf32, #tpu.memory_space<vmem>>, vector<1x8x8xf32>
    %45 = vector.shape_cast %44 : vector<1x8x8xf32> to vector<8x8xf32>
    %cst_30 = arith.constant dense<0.000000e+00> : vector<8x8xf32>
    %46 = tpu.matmul %9, %45, %cst_30 {dimension_numbers = #tpu.dot_dimension_numbers<[1], [0], [0], [1], [0, 0, 1, 1], [], []>} : vector<8x8xf32>, vector<8x8xf32>, vector<8x8xf32> -> vector<8x8xf32>
    %c1_31 = arith.constant 1 : index
    %c0_32 = arith.constant 0 : index
    %c0_33 = arith.constant 0 : index
    %47 = vector.load %arg4[%c1_31, %c0_32, %c0_33] : memref<3x8x8xf32, #tpu.memory_space<vmem>>, vector<1x8x8xf32>
    %48 = vector.shape_cast %47 : vector<1x8x8xf32> to vector<8x8xf32>
    %cst_34 = arith.constant dense<0.000000e+00> : vector<8x8xf32>
    %49 = tpu.matmul %17, %48, %cst_34 {dimension_numbers = #tpu.dot_dimension_numbers<[1], [0], [0], [1], [0, 0, 1, 1], [], []>} : vector<8x8xf32>, vector<8x8xf32>, vector<8x8xf32> -> vector<8x8xf32>
    %50 = arith.addf %46, %49 : vector<8x8xf32>
    %c2_35 = arith.constant 2 : index
    %c0_36 = arith.constant 0 : index
    %c0_37 = arith.constant 0 : index
    %51 = vector.load %arg4[%c2_35, %c0_36, %c0_37] : memref<3x8x8xf32, #tpu.memory_space<vmem>>, vector<1x8x8xf32>
    %52 = vector.shape_cast %51 : vector<1x8x8xf32> to vector<8x8xf32>
    %cst_38 = arith.constant dense<0.000000e+00> : vector<8x8xf32>
    %53 = tpu.matmul %29, %52, %cst_38 {dimension_numbers = #tpu.dot_dimension_numbers<[1], [0], [0], [1], [0, 0, 1, 1], [], []>} : vector<8x8xf32>, vector<8x8xf32>, vector<8x8xf32> -> vector<8x8xf32>
    %54 = arith.addf %50, %53 : vector<8x8xf32>
    %55 = vector.broadcast %30 : vector<1x8xf32> to vector<8x8xf32>
    %56 = arith.addf %54, %55 : vector<8x8xf32>
    %c0_39 = arith.constant 0 : index
    %c0_40 = arith.constant 0 : index
    %c0_41 = arith.constant 0 : index
    %c0_42 = arith.constant 0 : index
    %57 = vector.load %arg6[%c0_39, %c0_40, %c0_41, %c0_42] : memref<1x2x8x8xf32, #tpu.memory_space<vmem>>, vector<1x1x8x8xf32>
    %58 = vector.shape_cast %57 : vector<1x1x8x8xf32> to vector<8x8xf32>
    %59 = vector.shape_cast %43 : vector<8x8xf32> to vector<1x1x8x8xf32>
    tpu.vector_store %arg6[%c0_39, %c0_40, %c0_41, %c0_42], %59 {strides = array<i32>} : memref<1x2x8x8xf32, #tpu.memory_space<vmem>>, vector<1x1x8x8xf32>,
    %c0_43 = arith.constant 0 : index
    %c1_44 = arith.constant 1 : index
    %c0_45 = arith.constant 0 : index
    %c0_46 = arith.constant 0 : index
    %60 = vector.load %arg6[%c0_43, %c1_44, %c0_45, %c0_46] : memref<1x2x8x8xf32, #tpu.memory_space<vmem>>, vector<1x1x8x8xf32>
    %61 = vector.shape_cast %60 : vector<1x1x8x8xf32> to vector<8x8xf32>
    %62 = vector.shape_cast %56 : vector<8x8xf32> to vector<1x1x8x8xf32>
    tpu.vector_store %arg6[%c0_43, %c1_44, %c0_45, %c0_46], %62 {strides = array<i32>} : memref<1x2x8x8xf32, #tpu.memory_space<vmem>>, vector<1x1x8x8xf32>,
    return
  }
  func.func @transform_0(%arg0: i32) -> (i32, i32, i32, i32) {
    %c0_i32 = arith.constant 0 : i32
    %c0_i32_0 = arith.constant 0 : i32
    %c0_i32_1 = arith.constant 0 : i32
    %c0_i32_2 = arith.constant 0 : i32
    return %arg0, %c0_i32, %c0_i32_0, %c0_i32_1 : i32, i32, i32, i32
  }
  func.func @transform_1(%arg0: i32) -> (i32, i32) {
    %c0_i32 = arith.constant 0 : i32
    %c0_i32_0 = arith.constant 0 : i32
    %c0_i32_1 = arith.constant 0 : i32
    return %c0_i32, %c0_i32_0 : i32, i32
  }
  func.func @transform_2(%arg0: i32) -> (i32, i32) {
    %c0_i32 = arith.constant 0 : i32
    %c0_i32_0 = arith.constant 0 : i32
    %c0_i32_1 = arith.constant 0 : i32
    return %c0_i32, %c0_i32_0 : i32, i32
  }
  func.func @transform_3(%arg0: i32) -> (i32, i32, i32) {
    %c0_i32 = arith.constant 0 : i32
    %c0_i32_0 = arith.constant 0 : i32
    %c0_i32_1 = arith.constant 0 : i32
    %c0_i32_2 = arith.constant 0 : i32
    return %c0_i32, %c0_i32_0, %c0_i32_1 : i32, i32, i32
  }
  func.func @transform_4(%arg0: i32) -> (i32, i32) {
    %c0_i32 = arith.constant 0 : i32
    %c0_i32_0 = arith.constant 0 : i32
    %c0_i32_1 = arith.constant 0 : i32
    return %c0_i32, %c0_i32_0 : i32, i32
  }
  func.func @transform_5(%arg0: i32) -> (i32, i32, i32, i32) {
    %c0_i32 = arith.constant 0 : i32
    %c0_i32_0 = arith.constant 0 : i32
    %c0_i32_1 = arith.constant 0 : i32
    %c0_i32_2 = arith.constant 0 : i32
    return %arg0, %c0_i32, %c0_i32_0, %c0_i32_1 : i32, i32, i32, i32
  }
}

module attributes {stable_mosaic.version = 11 : i64} {
  func.func @_linear_stats_kernel(%arg0: i32, %arg1: memref<16x8xf32, #tpu.memory_space<vmem>>, %arg2: memref<8x4xf32, #tpu.memory_space<vmem>>, %arg3: memref<1x4xf32, #tpu.memory_space<vmem>>, %arg4: memref<16x4xf32, #tpu.memory_space<vmem>>, %arg5: memref<1x1x4xf32, #tpu.memory_space<vmem>>, %arg6: memref<1x1x4xf32, #tpu.memory_space<vmem>>) attributes {dimension_semantics = [#tpu.dimension_semantics<parallel>], iteration_bounds = array<i64: 1>, scalar_prefetch = 0 : i64, scratch_operands = 0 : i64, tpu.core_type = #tpu.core_type<tc>, window_params = [{transform_indices = @transform_0, window_bounds = array<i64: 16, 8>}, {pipeline_mode = #tpu.pipeline_mode<synchronous>, transform_indices = @transform_1, window_bounds = array<i64: 8, 4>}, {pipeline_mode = #tpu.pipeline_mode<synchronous>, transform_indices = @transform_2, window_bounds = array<i64: 1, 4>}, {transform_indices = @transform_3, window_bounds = array<i64: 16, 4>}, {transform_indices = @transform_4, window_bounds = array<i64: 1, 1, 4>}, {transform_indices = @transform_5, window_bounds = array<i64: 1, 1, 4>}]} {
    %c0 = arith.constant 0 : index
    %c0_0 = arith.constant 0 : index
    %0 = vector.load %arg1[%c0, %c0_0] : memref<16x8xf32, #tpu.memory_space<vmem>>, vector<16x8xf32>
    %c0_1 = arith.constant 0 : index
    %c0_2 = arith.constant 0 : index
    %1 = vector.load %arg2[%c0_1, %c0_2] : memref<8x4xf32, #tpu.memory_space<vmem>>, vector<8x4xf32>
    %cst = arith.constant dense<0.000000e+00> : vector<16x4xf32>
    %2 = tpu.matmul %0, %1, %cst {dimension_numbers = #tpu.dot_dimension_numbers<[1], [0], [0], [1], [0, 0, 1, 1], [], []>} : vector<16x8xf32>, vector<8x4xf32>, vector<16x4xf32> -> vector<16x4xf32>
    %c0_3 = arith.constant 0 : index
    %c0_4 = arith.constant 0 : index
    %3 = vector.load %arg3[%c0_3, %c0_4] : memref<1x4xf32, #tpu.memory_space<vmem>>, vector<1x4xf32>
    %4 = vector.broadcast %3 : vector<1x4xf32> to vector<16x4xf32>
    %5 = arith.addf %2, %4 : vector<16x4xf32>
    %c0_5 = arith.constant 0 : index
    %c0_6 = arith.constant 0 : index
    %6 = vector.load %arg4[%c0_5, %c0_6] : memref<16x4xf32, #tpu.memory_space<vmem>>, vector<16x4xf32>
    tpu.vector_store %arg4[%c0_5, %c0_6], %5 {strides = array<i32>} : memref<16x4xf32, #tpu.memory_space<vmem>>, vector<16x4xf32>,
    %cst_7 = arith.constant dense<0.000000e+00> : vector<4xf32>
    %7 = vector.multi_reduction <add>, %5, %cst_7 [0] : vector<16x4xf32> to vector<4xf32>
    %8 = vector.shape_cast %7 : vector<4xf32> to vector<1x4xf32>
    %c0_8 = arith.constant 0 : index
    %c0_9 = arith.constant 0 : index
    %c0_10 = arith.constant 0 : index
    %9 = vector.load %arg5[%c0_8, %c0_9, %c0_10] : memref<1x1x4xf32, #tpu.memory_space<vmem>>, vector<1x1x4xf32>
    %10 = vector.shape_cast %9 : vector<1x1x4xf32> to vector<1x4xf32>
    %11 = vector.shape_cast %8 : vector<1x4xf32> to vector<1x1x4xf32>
    tpu.vector_store %arg5[%c0_8, %c0_9, %c0_10], %11 {strides = array<i32>} : memref<1x1x4xf32, #tpu.memory_space<vmem>>, vector<1x1x4xf32>,
    %12 = arith.mulf %5, %5 : vector<16x4xf32>
    %cst_11 = arith.constant dense<0.000000e+00> : vector<4xf32>
    %13 = vector.multi_reduction <add>, %12, %cst_11 [0] : vector<16x4xf32> to vector<4xf32>
    %14 = vector.shape_cast %13 : vector<4xf32> to vector<1x4xf32>
    %c0_12 = arith.constant 0 : index
    %c0_13 = arith.constant 0 : index
    %c0_14 = arith.constant 0 : index
    %15 = vector.load %arg6[%c0_12, %c0_13, %c0_14] : memref<1x1x4xf32, #tpu.memory_space<vmem>>, vector<1x1x4xf32>
    %16 = vector.shape_cast %15 : vector<1x1x4xf32> to vector<1x4xf32>
    %17 = vector.shape_cast %14 : vector<1x4xf32> to vector<1x1x4xf32>
    tpu.vector_store %arg6[%c0_12, %c0_13, %c0_14], %17 {strides = array<i32>} : memref<1x1x4xf32, #tpu.memory_space<vmem>>, vector<1x1x4xf32>,
    return
  }
  func.func @transform_0(%arg0: i32) -> (i32, i32) {
    %c0_i32 = arith.constant 0 : i32
    %c0_i32_0 = arith.constant 0 : i32
    return %arg0, %c0_i32 : i32, i32
  }
  func.func @transform_1(%arg0: i32) -> (i32, i32) {
    %c0_i32 = arith.constant 0 : i32
    %c0_i32_0 = arith.constant 0 : i32
    %c0_i32_1 = arith.constant 0 : i32
    return %c0_i32, %c0_i32_0 : i32, i32
  }
  func.func @transform_2(%arg0: i32) -> (i32, i32) {
    %c0_i32 = arith.constant 0 : i32
    %c0_i32_0 = arith.constant 0 : i32
    %c0_i32_1 = arith.constant 0 : i32
    return %c0_i32, %c0_i32_0 : i32, i32
  }
  func.func @transform_3(%arg0: i32) -> (i32, i32) {
    %c0_i32 = arith.constant 0 : i32
    %c0_i32_0 = arith.constant 0 : i32
    return %arg0, %c0_i32 : i32, i32
  }
  func.func @transform_4(%arg0: i32) -> (i32, i32, i32) {
    %c0_i32 = arith.constant 0 : i32
    %c0_i32_0 = arith.constant 0 : i32
    %c0_i32_1 = arith.constant 0 : i32
    return %arg0, %c0_i32, %c0_i32_0 : i32, i32, i32
  }
  func.func @transform_5(%arg0: i32) -> (i32, i32, i32) {
    %c0_i32 = arith.constant 0 : i32
    %c0_i32_0 = arith.constant 0 : i32
    %c0_i32_1 = arith.constant 0 : i32
    return %arg0, %c0_i32, %c0_i32_0 : i32, i32, i32
  }
}

module attributes {stable_mosaic.version = 11 : i64} {
  func.func @_bn_relu_conv3_concat_eo_kernel(%arg0: i32, %arg1: memref<1x2x8x4xf32, #tpu.memory_space<vmem>>, %arg2: memref<1x8x4xf32, #tpu.memory_space<vmem>>, %arg3: memref<1x4xf32, #tpu.memory_space<vmem>>, %arg4: memref<1x4xf32, #tpu.memory_space<vmem>>, %arg5: memref<1x4xf32, #tpu.memory_space<vmem>>, %arg6: memref<1x4xf32, #tpu.memory_space<vmem>>, %arg7: memref<3x4x8xf32, #tpu.memory_space<vmem>>, %arg8: memref<4x4x8xf32, #tpu.memory_space<vmem>>, %arg9: memref<1x8xf32, #tpu.memory_space<vmem>>, %arg10: memref<1x2x8x8xf32, #tpu.memory_space<vmem>>, %arg11: memref<1x1x8xf32, #tpu.memory_space<vmem>>, %arg12: memref<1x1x8xf32, #tpu.memory_space<vmem>>) attributes {dimension_semantics = [#tpu.dimension_semantics<parallel>], iteration_bounds = array<i64: 2>, scalar_prefetch = 0 : i64, scratch_operands = 0 : i64, tpu.core_type = #tpu.core_type<tc>, window_params = [{transform_indices = @transform_0, window_bounds = array<i64: 1, 2, 8, 4>}, {transform_indices = @transform_1, window_bounds = array<i64: 1, 8, 4>}, {pipeline_mode = #tpu.pipeline_mode<synchronous>, transform_indices = @transform_2, window_bounds = array<i64: 1, 4>}, {pipeline_mode = #tpu.pipeline_mode<synchronous>, transform_indices = @transform_3, window_bounds = array<i64: 1, 4>}, {pipeline_mode = #tpu.pipeline_mode<synchronous>, transform_indices = @transform_4, window_bounds = array<i64: 1, 4>}, {pipeline_mode = #tpu.pipeline_mode<synchronous>, transform_indices = @transform_5, window_bounds = array<i64: 1, 4>}, {pipeline_mode = #tpu.pipeline_mode<synchronous>, transform_indices = @transform_6, window_bounds = array<i64: 3, 4, 8>}, {pipeline_mode = #tpu.pipeline_mode<synchronous>, transform_indices = @transform_7, window_bounds = array<i64: 4, 4, 8>}, {pipeline_mode = #tpu.pipeline_mode<synchronous>, transform_indices = @transform_8, window_bounds = array<i64: 1, 8>}, {transform_indices = @transform_9, window_bounds = array<i64: 1, 2, 8, 8>}, {transform_indices = @transform_10, window_bounds = array<i64: 1, 1, 8>}, {transform_indices = @transform_11, window_bounds = array<i64: 1, 1, 8>}]} {
    %c0 = arith.constant 0 : index
    %c0_0 = arith.constant 0 : index
    %0 = vector.load %arg3[%c0, %c0_0] : memref<1x4xf32, #tpu.memory_space<vmem>>, vector<1x4xf32>
    %c0_1 = arith.constant 0 : index
    %c0_2 = arith.constant 0 : index
    %1 = vector.load %arg4[%c0_1, %c0_2] : memref<1x4xf32, #tpu.memory_space<vmem>>, vector<1x4xf32>
    %c0_3 = arith.constant 0 : index
    %c0_4 = arith.constant 0 : index
    %2 = vector.load %arg5[%c0_3, %c0_4] : memref<1x4xf32, #tpu.memory_space<vmem>>, vector<1x4xf32>
    %c0_5 = arith.constant 0 : index
    %c0_6 = arith.constant 0 : index
    %3 = vector.load %arg6[%c0_5, %c0_6] : memref<1x4xf32, #tpu.memory_space<vmem>>, vector<1x4xf32>
    %c0_7 = arith.constant 0 : index
    %c0_8 = arith.constant 0 : index
    %c0_9 = arith.constant 0 : index
    %c0_10 = arith.constant 0 : index
    %4 = vector.load %arg1[%c0_7, %c0_8, %c0_9, %c0_10] : memref<1x2x8x4xf32, #tpu.memory_space<vmem>>, vector<1x1x8x4xf32>
    %5 = vector.shape_cast %4 : vector<1x1x8x4xf32> to vector<8x4xf32>
    %6 = vector.broadcast %0 : vector<1x4xf32> to vector<8x4xf32>
    %7 = arith.mulf %5, %6 : vector<8x4xf32>
    %8 = vector.broadcast %1 : vector<1x4xf32> to vector<8x4xf32>
    %9 = arith.addf %7, %8 : vector<8x4xf32>
    %cst = arith.constant 0.000000e+00 : f32
    %10 = vector.broadcast %cst : f32 to vector<8x4xf32>
    %11 = arith.maximumf %9, %10 : vector<8x4xf32>
    %c0_11 = arith.constant 0 : index
    %c1 = arith.constant 1 : index
    %c0_12 = arith.constant 0 : index
    %c0_13 = arith.constant 0 : index
    %12 = vector.load %arg1[%c0_11, %c1, %c0_12, %c0_13] : memref<1x2x8x4xf32, #tpu.memory_space<vmem>>, vector<1x1x8x4xf32>
    %13 = vector.shape_cast %12 : vector<1x1x8x4xf32> to vector<8x4xf32>
    %14 = vector.broadcast %0 : vector<1x4xf32> to vector<8x4xf32>
    %15 = arith.mulf %13, %14 : vector<8x4xf32>
    %16 = vector.broadcast %1 : vector<1x4xf32> to vector<8x4xf32>
    %17 = arith.addf %15, %16 : vector<8x4xf32>
    %cst_14 = arith.constant 0.000000e+00 : f32
    %18 = vector.broadcast %cst_14 : f32 to vector<8x4xf32>
    %19 = arith.maximumf %17, %18 : vector<8x4xf32>
    %c0_15 = arith.constant 0 : index
    %c0_16 = arith.constant 0 : index
    %c0_17 = arith.constant 0 : index
    %20 = vector.load %arg2[%c0_15, %c0_16, %c0_17] : memref<1x8x4xf32, #tpu.memory_space<vmem>>, vector<1x8x4xf32>
    %21 = vector.shape_cast %20 : vector<1x8x4xf32> to vector<8x4xf32>
    %22 = vector.broadcast %2 : vector<1x4xf32> to vector<8x4xf32>
    %23 = arith.mulf %21, %22 : vector<8x4xf32>
    %24 = vector.broadcast %3 : vector<1x4xf32> to vector<8x4xf32>
    %25 = arith.addf %23, %24 : vector<8x4xf32>
    %cst_18 = arith.constant 0.000000e+00 : f32
    %26 = vector.broadcast %cst_18 : f32 to vector<8x4xf32>
    %27 = arith.maximumf %25, %26 : vector<8x4xf32>
    %c1_i32 = arith.constant 1 : i32
    %28 = tpu.dynamic_rotate %19 by %c1_i32 dim 0 : vector<8x4xf32>, i32 -> vector<8x4xf32>
    %29 = tpu.iota {dimensions = array<i32: 0>} : vector<8x4xi32>
    %c0_i32 = arith.constant 0 : i32
    %30 = vector.broadcast %c0_i32 : i32 to vector<8x4xi32>
    %31 = arith.cmpi eq, %29, %30 : vector<8x4xi32>
    %cst_19 = arith.constant 0.000000e+00 : f32
    %32 = vector.broadcast %cst_19 : f32 to vector<8x4xf32>
    %33 = arith.select %31, %32, %28 : vector<8x4xi1>, vector<8x4xf32>
    %c7_i32 = arith.constant 7 : i32
    %34 = tpu.dynamic_rotate %11 by %c7_i32 dim 0 : vector<8x4xf32>, i32 -> vector<8x4xf32>
    %35 = tpu.iota {dimensions = array<i32: 0>} : vector<8x4xi32>
    %c7_i32_20 = arith.constant 7 : i32
    %36 = vector.broadcast %c7_i32_20 : i32 to vector<8x4xi32>
    %37 = arith.cmpi eq, %35, %36 : vector<8x4xi32>
    %cst_21 = arith.constant 0.000000e+00 : f32
    %38 = vector.broadcast %cst_21 : f32 to vector<8x4xf32>
    %39 = arith.select %37, %38, %34 : vector<8x4xi1>, vector<8x4xf32>
    %c1_i32_22 = arith.constant 1 : i32
    %40 = tpu.dynamic_rotate %27 by %c1_i32_22 dim 0 : vector<8x4xf32>, i32 -> vector<8x4xf32>
    %41 = tpu.iota {dimensions = array<i32: 0>} : vector<8x4xi32>
    %c0_i32_23 = arith.constant 0 : i32
    %42 = vector.broadcast %c0_i32_23 : i32 to vector<8x4xi32>
    %43 = arith.cmpi eq, %41, %42 : vector<8x4xi32>
    %cst_24 = arith.constant 0.000000e+00 : f32
    %44 = vector.broadcast %cst_24 : f32 to vector<8x4xf32>
    %45 = arith.select %43, %44, %40 : vector<8x4xi1>, vector<8x4xf32>
    %c7_i32_25 = arith.constant 7 : i32
    %46 = tpu.dynamic_rotate %27 by %c7_i32_25 dim 0 : vector<8x4xf32>, i32 -> vector<8x4xf32>
    %47 = tpu.iota {dimensions = array<i32: 0>} : vector<8x4xi32>
    %c7_i32_26 = arith.constant 7 : i32
    %48 = vector.broadcast %c7_i32_26 : i32 to vector<8x4xi32>
    %49 = arith.cmpi eq, %47, %48 : vector<8x4xi32>
    %cst_27 = arith.constant 0.000000e+00 : f32
    %50 = vector.broadcast %cst_27 : f32 to vector<8x4xf32>
    %51 = arith.select %49, %50, %46 : vector<8x4xi1>, vector<8x4xf32>
    %c0_28 = arith.constant 0 : index
    %c0_29 = arith.constant 0 : index
    %52 = vector.load %arg9[%c0_28, %c0_29] : memref<1x8xf32, #tpu.memory_space<vmem>>, vector<1x8xf32>
    %c0_30 = arith.constant 0 : index
    %c0_31 = arith.constant 0 : index
    %c0_32 = arith.constant 0 : index
    %53 = vector.load %arg7[%c0_30, %c0_31, %c0_32] : memref<3x4x8xf32, #tpu.memory_space<vmem>>, vector<1x4x8xf32>
    %54 = vector.shape_cast %53 : vector<1x4x8xf32> to vector<4x8xf32>
    %cst_33 = arith.constant dense<0.000000e+00> : vector<8x8xf32>
    %55 = tpu.matmul %33, %54, %cst_33 {dimension_numbers = #tpu.dot_dimension_numbers<[1], [0], [0], [1], [0, 0, 1, 1], [], []>} : vector<8x4xf32>, vector<4x8xf32>, vector<8x8xf32> -> vector<8x8xf32>
    %c1_34 = arith.constant 1 : index
    %c0_35 = arith.constant 0 : index
    %c0_36 = arith.constant 0 : index
    %56 = vector.load %arg7[%c1_34, %c0_35, %c0_36] : memref<3x4x8xf32, #tpu.memory_space<vmem>>, vector<1x4x8xf32>
    %57 = vector.shape_cast %56 : vector<1x4x8xf32> to vector<4x8xf32>
    %cst_37 = arith.constant dense<0.000000e+00> : vector<8x8xf32>
    %58 = tpu.matmul %11, %57, %cst_37 {dimension_numbers = #tpu.dot_dimension_numbers<[1], [0], [0], [1], [0, 0, 1, 1], [], []>} : vector<8x4xf32>, vector<4x8xf32>, vector<8x8xf32> -> vector<8x8xf32>
    %59 = arith.addf %55, %58 : vector<8x8xf32>
    %c2 = arith.constant 2 : index
    %c0_38 = arith.constant 0 : index
    %c0_39 = arith.constant 0 : index
    %60 = vector.load %arg7[%c2, %c0_38, %c0_39] : memref<3x4x8xf32, #tpu.memory_space<vmem>>, vector<1x4x8xf32>
    %61 = vector.shape_cast %60 : vector<1x4x8xf32> to vector<4x8xf32>
    %cst_40 = arith.constant dense<0.000000e+00> : vector<8x8xf32>
    %62 = tpu.matmul %19, %61, %cst_40 {dimension_numbers = #tpu.dot_dimension_numbers<[1], [0], [0], [1], [0, 0, 1, 1], [], []>} : vector<8x4xf32>, vector<4x8xf32>, vector<8x8xf32> -> vector<8x8xf32>
    %63 = arith.addf %59, %62 : vector<8x8xf32>
    %c0_41 = arith.constant 0 : index
    %c0_42 = arith.constant 0 : index
    %c0_43 = arith.constant 0 : index
    %64 = vector.load %arg8[%c0_41, %c0_42, %c0_43] : memref<4x4x8xf32, #tpu.memory_space<vmem>>, vector<1x4x8xf32>
    %65 = vector.shape_cast %64 : vector<1x4x8xf32> to vector<4x8xf32>
    %cst_44 = arith.constant dense<0.000000e+00> : vector<8x8xf32>
    %66 = tpu.matmul %45, %65, %cst_44 {dimension_numbers = #tpu.dot_dimension_numbers<[1], [0], [0], [1], [0, 0, 1, 1], [], []>} : vector<8x4xf32>, vector<4x8xf32>, vector<8x8xf32> -> vector<8x8xf32>
    %67 = arith.addf %63, %66 : vector<8x8xf32>
    %c1_45 = arith.constant 1 : index
    %c0_46 = arith.constant 0 : index
    %c0_47 = arith.constant 0 : index
    %68 = vector.load %arg8[%c1_45, %c0_46, %c0_47] : memref<4x4x8xf32, #tpu.memory_space<vmem>>, vector<1x4x8xf32>
    %69 = vector.shape_cast %68 : vector<1x4x8xf32> to vector<4x8xf32>
    %cst_48 = arith.constant dense<0.000000e+00> : vector<8x8xf32>
    %70 = tpu.matmul %27, %69, %cst_48 {dimension_numbers = #tpu.dot_dimension_numbers<[1], [0], [0], [1], [0, 0, 1, 1], [], []>} : vector<8x4xf32>, vector<4x8xf32>, vector<8x8xf32> -> vector<8x8xf32>
    %71 = arith.addf %67, %70 : vector<8x8xf32>
    %72 = vector.broadcast %52 : vector<1x8xf32> to vector<8x8xf32>
    %73 = arith.addf %71, %72 : vector<8x8xf32>
    %c0_49 = arith.constant 0 : index
    %c0_50 = arith.constant 0 : index
    %c0_51 = arith.constant 0 : index
    %74 = vector.load %arg7[%c0_49, %c0_50, %c0_51] : memref<3x4x8xf32, #tpu.memory_space<vmem>>, vector<1x4x8xf32>
    %75 = vector.shape_cast %74 : vector<1x4x8xf32> to vector<4x8xf32>
    %cst_52 = arith.constant dense<0.000000e+00> : vector<8x8xf32>
    %76 = tpu.matmul %11, %75, %cst_52 {dimension_numbers = #tpu.dot_dimension_numbers<[1], [0], [0], [1], [0, 0, 1, 1], [], []>} : vector<8x4xf32>, vector<4x8xf32>, vector<8x8xf32> -> vector<8x8xf32>
    %c1_53 = arith.constant 1 : index
    %c0_54 = arith.constant 0 : index
    %c0_55 = arith.constant 0 : index
    %77 = vector.load %arg7[%c1_53, %c0_54, %c0_55] : memref<3x4x8xf32, #tpu.memory_space<vmem>>, vector<1x4x8xf32>
    %78 = vector.shape_cast %77 : vector<1x4x8xf32> to vector<4x8xf32>
    %cst_56 = arith.constant dense<0.000000e+00> : vector<8x8xf32>
    %79 = tpu.matmul %19, %78, %cst_56 {dimension_numbers = #tpu.dot_dimension_numbers<[1], [0], [0], [1], [0, 0, 1, 1], [], []>} : vector<8x4xf32>, vector<4x8xf32>, vector<8x8xf32> -> vector<8x8xf32>
    %80 = arith.addf %76, %79 : vector<8x8xf32>
    %c2_57 = arith.constant 2 : index
    %c0_58 = arith.constant 0 : index
    %c0_59 = arith.constant 0 : index
    %81 = vector.load %arg7[%c2_57, %c0_58, %c0_59] : memref<3x4x8xf32, #tpu.memory_space<vmem>>, vector<1x4x8xf32>
    %82 = vector.shape_cast %81 : vector<1x4x8xf32> to vector<4x8xf32>
    %cst_60 = arith.constant dense<0.000000e+00> : vector<8x8xf32>
    %83 = tpu.matmul %39, %82, %cst_60 {dimension_numbers = #tpu.dot_dimension_numbers<[1], [0], [0], [1], [0, 0, 1, 1], [], []>} : vector<8x4xf32>, vector<4x8xf32>, vector<8x8xf32> -> vector<8x8xf32>
    %84 = arith.addf %80, %83 : vector<8x8xf32>
    %c2_61 = arith.constant 2 : index
    %c0_62 = arith.constant 0 : index
    %c0_63 = arith.constant 0 : index
    %85 = vector.load %arg8[%c2_61, %c0_62, %c0_63] : memref<4x4x8xf32, #tpu.memory_space<vmem>>, vector<1x4x8xf32>
    %86 = vector.shape_cast %85 : vector<1x4x8xf32> to vector<4x8xf32>
    %cst_64 = arith.constant dense<0.000000e+00> : vector<8x8xf32>
    %87 = tpu.matmul %27, %86, %cst_64 {dimension_numbers = #tpu.dot_dimension_numbers<[1], [0], [0], [1], [0, 0, 1, 1], [], []>} : vector<8x4xf32>, vector<4x8xf32>, vector<8x8xf32> -> vector<8x8xf32>
    %88 = arith.addf %84, %87 : vector<8x8xf32>
    %c3 = arith.constant 3 : index
    %c0_65 = arith.constant 0 : index
    %c0_66 = arith.constant 0 : index
    %89 = vector.load %arg8[%c3, %c0_65, %c0_66] : memref<4x4x8xf32, #tpu.memory_space<vmem>>, vector<1x4x8xf32>
    %90 = vector.shape_cast %89 : vector<1x4x8xf32> to vector<4x8xf32>
    %cst_67 = arith.constant dense<0.000000e+00> : vector<8x8xf32>
    %91 = tpu.matmul %51, %90, %cst_67 {dimension_numbers = #tpu.dot_dimension_numbers<[1], [0], [0], [1], [0, 0, 1, 1], [], []>} : vector<8x4xf32>, vector<4x8xf32>, vector<8x8xf32> -> vector<8x8xf32>
    %92 = arith.addf %88, %91 : vector<8x8xf32>
    %93 = vector.broadcast %52 : vector<1x8xf32> to vector<8x8xf32>
    %94 = arith.addf %92, %93 : vector<8x8xf32>
    %c0_68 = arith.constant 0 : index
    %c0_69 = arith.constant 0 : index
    %c0_70 = arith.constant 0 : index
    %c0_71 = arith.constant 0 : index
    %95 = vector.load %arg10[%c0_68, %c0_69, %c0_70, %c0_71] : memref<1x2x8x8xf32, #tpu.memory_space<vmem>>, vector<1x1x8x8xf32>
    %96 = vector.shape_cast %95 : vector<1x1x8x8xf32> to vector<8x8xf32>
    %97 = vector.shape_cast %73 : vector<8x8xf32> to vector<1x1x8x8xf32>
    tpu.vector_store %arg10[%c0_68, %c0_69, %c0_70, %c0_71], %97 {strides = array<i32>} : memref<1x2x8x8xf32, #tpu.memory_space<vmem>>, vector<1x1x8x8xf32>,
    %c0_72 = arith.constant 0 : index
    %c1_73 = arith.constant 1 : index
    %c0_74 = arith.constant 0 : index
    %c0_75 = arith.constant 0 : index
    %98 = vector.load %arg10[%c0_72, %c1_73, %c0_74, %c0_75] : memref<1x2x8x8xf32, #tpu.memory_space<vmem>>, vector<1x1x8x8xf32>
    %99 = vector.shape_cast %98 : vector<1x1x8x8xf32> to vector<8x8xf32>
    %100 = vector.shape_cast %94 : vector<8x8xf32> to vector<1x1x8x8xf32>
    tpu.vector_store %arg10[%c0_72, %c1_73, %c0_74, %c0_75], %100 {strides = array<i32>} : memref<1x2x8x8xf32, #tpu.memory_space<vmem>>, vector<1x1x8x8xf32>,
    %cst_76 = arith.constant dense<0.000000e+00> : vector<8xf32>
    %101 = vector.multi_reduction <add>, %73, %cst_76 [0] : vector<8x8xf32> to vector<8xf32>
    %102 = vector.shape_cast %101 : vector<8xf32> to vector<1x8xf32>
    %cst_77 = arith.constant dense<0.000000e+00> : vector<8xf32>
    %103 = vector.multi_reduction <add>, %94, %cst_77 [0] : vector<8x8xf32> to vector<8xf32>
    %104 = vector.shape_cast %103 : vector<8xf32> to vector<1x8xf32>
    %105 = arith.addf %102, %104 : vector<1x8xf32>
    %c0_78 = arith.constant 0 : index
    %c0_79 = arith.constant 0 : index
    %c0_80 = arith.constant 0 : index
    %106 = vector.load %arg11[%c0_78, %c0_79, %c0_80] : memref<1x1x8xf32, #tpu.memory_space<vmem>>, vector<1x1x8xf32>
    %107 = vector.shape_cast %106 : vector<1x1x8xf32> to vector<1x8xf32>
    %108 = vector.shape_cast %105 : vector<1x8xf32> to vector<1x1x8xf32>
    tpu.vector_store %arg11[%c0_78, %c0_79, %c0_80], %108 {strides = array<i32>} : memref<1x1x8xf32, #tpu.memory_space<vmem>>, vector<1x1x8xf32>,
    %109 = arith.mulf %73, %73 : vector<8x8xf32>
    %cst_81 = arith.constant dense<0.000000e+00> : vector<8xf32>
    %110 = vector.multi_reduction <add>, %109, %cst_81 [0] : vector<8x8xf32> to vector<8xf32>
    %111 = vector.shape_cast %110 : vector<8xf32> to vector<1x8xf32>
    %112 = arith.mulf %94, %94 : vector<8x8xf32>
    %cst_82 = arith.constant dense<0.000000e+00> : vector<8xf32>
    %113 = vector.multi_reduction <add>, %112, %cst_82 [0] : vector<8x8xf32> to vector<8xf32>
    %114 = vector.shape_cast %113 : vector<8xf32> to vector<1x8xf32>
    %115 = arith.addf %111, %114 : vector<1x8xf32>
    %c0_83 = arith.constant 0 : index
    %c0_84 = arith.constant 0 : index
    %c0_85 = arith.constant 0 : index
    %116 = vector.load %arg12[%c0_83, %c0_84, %c0_85] : memref<1x1x8xf32, #tpu.memory_space<vmem>>, vector<1x1x8xf32>
    %117 = vector.shape_cast %116 : vector<1x1x8xf32> to vector<1x8xf32>
    %118 = vector.shape_cast %115 : vector<1x8xf32> to vector<1x1x8xf32>
    tpu.vector_store %arg12[%c0_83, %c0_84, %c0_85], %118 {strides = array<i32>} : memref<1x1x8xf32, #tpu.memory_space<vmem>>, vector<1x1x8xf32>,
    return
  }
  func.func @transform_0(%arg0: i32) -> (i32, i32, i32, i32) {
    %c0_i32 = arith.constant 0 : i32
    %c0_i32_0 = arith.constant 0 : i32
    %c0_i32_1 = arith.constant 0 : i32
    %c0_i32_2 = arith.constant 0 : i32
    return %arg0, %c0_i32, %c0_i32_0, %c0_i32_1 : i32, i32, i32, i32
  }
  func.func @transform_1(%arg0: i32) -> (i32, i32, i32) {
    %c0_i32 = arith.constant 0 : i32
    %c0_i32_0 = arith.constant 0 : i32
    %c0_i32_1 = arith.constant 0 : i32
    return %arg0, %c0_i32, %c0_i32_0 : i32, i32, i32
  }
  func.func @transform_2(%arg0: i32) -> (i32, i32) {
    %c0_i32 = arith.constant 0 : i32
    %c0_i32_0 = arith.constant 0 : i32
    %c0_i32_1 = arith.constant 0 : i32
    return %c0_i32, %c0_i32_0 : i32, i32
  }
  func.func @transform_3(%arg0: i32) -> (i32, i32) {
    %c0_i32 = arith.constant 0 : i32
    %c0_i32_0 = arith.constant 0 : i32
    %c0_i32_1 = arith.constant 0 : i32
    return %c0_i32, %c0_i32_0 : i32, i32
  }
  func.func @transform_4(%arg0: i32) -> (i32, i32) {
    %c0_i32 = arith.constant 0 : i32
    %c0_i32_0 = arith.constant 0 : i32
    %c0_i32_1 = arith.constant 0 : i32
    return %c0_i32, %c0_i32_0 : i32, i32
  }
  func.func @transform_5(%arg0: i32) -> (i32, i32) {
    %c0_i32 = arith.constant 0 : i32
    %c0_i32_0 = arith.constant 0 : i32
    %c0_i32_1 = arith.constant 0 : i32
    return %c0_i32, %c0_i32_0 : i32, i32
  }
  func.func @transform_6(%arg0: i32) -> (i32, i32, i32) {
    %c0_i32 = arith.constant 0 : i32
    %c0_i32_0 = arith.constant 0 : i32
    %c0_i32_1 = arith.constant 0 : i32
    %c0_i32_2 = arith.constant 0 : i32
    return %c0_i32, %c0_i32_0, %c0_i32_1 : i32, i32, i32
  }
  func.func @transform_7(%arg0: i32) -> (i32, i32, i32) {
    %c0_i32 = arith.constant 0 : i32
    %c0_i32_0 = arith.constant 0 : i32
    %c0_i32_1 = arith.constant 0 : i32
    %c0_i32_2 = arith.constant 0 : i32
    return %c0_i32, %c0_i32_0, %c0_i32_1 : i32, i32, i32
  }
  func.func @transform_8(%arg0: i32) -> (i32, i32) {
    %c0_i32 = arith.constant 0 : i32
    %c0_i32_0 = arith.constant 0 : i32
    %c0_i32_1 = arith.constant 0 : i32
    return %c0_i32, %c0_i32_0 : i32, i32
  }
  func.func @transform_9(%arg0: i32) -> (i32, i32, i32, i32) {
    %c0_i32 = arith.constant 0 : i32
    %c0_i32_0 = arith.constant 0 : i32
    %c0_i32_1 = arith.constant 0 : i32
    %c0_i32_2 = arith.constant 0 : i32
    return %arg0, %c0_i32, %c0_i32_0, %c0_i32_1 : i32, i32, i32, i32
  }
  func.func @transform_10(%arg0: i32) -> (i32, i32, i32) {
    %c0_i32 = arith.constant 0 : i32
    %c0_i32_0 = arith.constant 0 : i32
    %c0_i32_1 = arith.constant 0 : i32
    return %arg0, %c0_i32, %c0_i32_0 : i32, i32, i32
  }
  func.func @transform_11(%arg0: i32) -> (i32, i32, i32) {
    %c0_i32 = arith.constant 0 : i32
    %c0_i32_0 = arith.constant 0 : i32
    %c0_i32_1 = arith.constant 0 : i32
    return %arg0, %c0_i32, %c0_i32_0 : i32, i32, i32
  }
}

</mosaic_0001>

<bundles_post_ra>
// kernel: up_conv_forward.3
= control target key start
LH: loop header
LB: loop body
LE: loop exit
PB: predicated region body
PF: predicated region fallthrough
CT: control target
= control target key end

     0   :  { %vm27_vm0 = vcmask 64512   ;;  %vm109_vm1 = vcmask 31744   ;;  %vm121_vm2 = vcmask 24576   ;;  %s212_s1 = inlined_call_operand.vmem [shape: f32[8,4], index: 1, kind: input, shape index: {}]   ;;  %s213_s0 = inlined_call_operand.vmem [shape: f32[16,8], index: 0, kind: input, shape index: {}]   ;;  %s214_s2 = inlined_call_operand.vmem [shape: f32[1,4], index: 2, kind: input, shape index: {}]   ;;  %s215_s3 = inlined_call_operand.vmem [shape: f32[16,4], index: 3, kind: output, shape index: {0}]   ;;  %s216_s4 = inlined_call_operand.vmem [shape: f32[1,1,4], index: 4, kind: output, shape index: {1}]   ;;  %s217_s5 = inlined_call_operand.vmem [shape: f32[1,1,4], index: 5, kind: output, shape index: {2}]  }
   0x1   :  { %v19_v0 = vld [vmem:[%s212_s1] sm:$0xff]  ;;  %v18_v2 = vld [vmem:[%s213_s0 + $0x8] sm:$0xff] }
   0x2   :  { %v17_v1 = vld [vmem:[%s213_s0] sm:$0xff]  ;;  %153 = vmatprep.subr.mxu0 %v19_v0 }
   0x3   :  { %155 = vmatprep.mubr.msk.f32.mxu0 %vm27_vm0, %v17_v1  ;;  %154 = vmatpush3.msra.mxu0 %v19_v0  ;;  %v147_v3 = vld [vmem:[%s214_s2] ss:$0 sm:$0xff] }
   0x4   :  { %156 = vmatmul.mubr.msk.f32.vlgmr.msra.gmra.mxu0 %vm27_vm0, %v18_v2 }
  0xc4   :  { %v157_v4 = vpop.f32.mrf.mxu0 }
  0xc5   :  { %v106_v5 = vadd.f32 %v157_v4, %v147_v3 }
  0xc6   :  { %v100_v6 = vpop.f32.mrf.mxu0 }
  0xc7   :  { %111 = vst.msk [vmem:[%s215_s3 + $0x8] sm:$0xff] %vm109_vm1, %v106_v5  ;;  %v124_v7 = vmul.f32 %v106_v5, %v106_v5  ;;  %v101_v8 = vadd.f32 %v147_v3, %v100_v6  ;;  %v113_v9 = vsel %vm109_vm1, %v106_v5, 0.0 }
  0xc9   :  { %110 = vst.msk [vmem:[%s215_s3] sm:$0xff] %vm109_vm1, %v101_v8  ;;  %v112_v10 = vsel %vm109_vm1, %v101_v8, 0.0  ;;  %v123_v11 = vmul.f32 %v101_v8, %v101_v8  ;;  %v126_v13 = vsel %vm109_vm1, %v124_v7, 0.0 }
  0xca   :  { %v114_v12 = vadd.f32 %v113_v9, %v112_v10 }
  0xcb   :  { %v125_v14 = vsel %vm109_vm1, %v123_v11, 0.0 }
  0xcc   :  { %v115_v15 = vrot.slane %v114_v12, 4  ;;  %v127_v16 = vadd.f32 %v126_v13, %v125_v14 }
  0xce   :  { %v116_v17 = vadd.f32 %v115_v15, %v114_v12  ;;  %v128_v18 = vrot.slane %v127_v16, 4 }
  0xd0   :  { %v117_v19 = vrot.slane %v116_v17, 2  ;;  %v129_v20 = vadd.f32 %v128_v18, %v127_v16 }
  0xd2   :  { %v118_v21 = vadd.f32 %v117_v19, %v116_v17  ;;  %v130_v22 = vrot.slane %v129_v20, 2 }
  0xd4   :  { %v119_v23 = vrot.slane %v118_v21, 1  ;;  %v131_v24 = vadd.f32 %v130_v22, %v129_v20 }
  0xd6   :  { %v120_v25 = vadd.f32 %v119_v23, %v118_v21  ;;  %v132_v26 = vrot.slane %v131_v24, 1 }
  0xd8   :  { %122 = vst.msk [vmem:[%s216_s4] sm:$0x1] %vm121_vm2, %v120_v25  ;;  %v133_v27 = vadd.f32 %v132_v26, %v131_v24 }
  0xda   :  { %134 = vst.msk [vmem:[%s217_s5] sm:$0x1] %vm121_vm2, %v133_v27 }

// kernel: up_conv_forward.5
= control target key start
LH: loop header
LB: loop body
LE: loop exit
PB: predicated region body
PF: predicated region fallthrough
CT: control target
= control target key end

     0   :  { %s881_s18 = smov 0   ;;  %s937_s0 = inlined_call_operand.vmem [shape: f32[2,2,8,8], index: 0, kind: input, shape index: {}]   ;;  %s938_s1 = inlined_call_operand.vmem [shape: f32[1,8], index: 1, kind: input, shape index: {}]   ;;  %s939_s2 = inlined_call_operand.vmem [shape: f32[1,8], index: 2, kind: input, shape index: {}]   ;;  %s940_s3 = inlined_call_operand.vmem [shape: f32[3,8,8], index: 3, kind: input, shape index: {}]   ;;  %s941_s4 = inlined_call_operand.vmem [shape: f32[1,8], index: 4, kind: input, shape index: {}]   ;;  %s942_s5 = inlined_call_operand.vmem [shape: f32[2,2,8,8], index: 5, kind: output, shape index: {}]  }
   0x1 LB: > { %s763_s19 = sadd.s32 4294967295, %s847_s18   ;;  %p767_p0 = scmp.ge.s32.totalorder %s847_s18, 1  ;;  %s847_s18 = sphi %s881_s18, %s15_s18  }
   0x2   : > { %p187_p1 = scmp.lt.s32.totalorder %s847_s18, 3 }
   0x4   : > { %p188_p2 = pnand %p767_p0, %p187_p1 }
   0x5   : > { %p215_p3 = scmp.lt.s32.totalorder (!%p188_p2), %s763_s19, 1 }
   0x6   : > { %191 = sbr.rel (%p188_p2) target bundleno = 230 (0xe6), region = 40 }
   0xb   : > { %v775_v0 = vld [vmem:[%s940_s3 + $0x8] sm:$0xff]  ;;  %v849_v1 = vmov 0.0   ;;  %vm850_vm0 = vmmov 0   ;;  %v257_v2 = vld [vmem:[%s940_s3] sm:$0xff]  ;;  %s944_s19 = smov (!%p215_p3, %s763_s19), 1  ;;  %v249_v4 = vlaneseq  ;;  %vm260_vm1 = vcmask 64512  }
   0xc   : > { %801 = vmatprep.subr.mxu0 %v849_v1  ;;  %803 = vmatprep.mubr.msk.f32.mxu0 %vm850_vm0, %v849_v1  ;;  %s787_s24 = sshll.u32 %s944_s19, 4  ;;  %v772_v3 = vld [vmem:[%s938_s1] ss:$0 sm:$0xff]  ;;  %v778_v14 = vld [vmem:[%s940_s3 + $0x10] sm:$0xff] }
   0xd   : > { %802 = vmatpush3.msra.mxu0 %v775_v0  ;;  %806 = vmatprep.subr.mxu1 %v849_v1  ;;  %s219_s29 = scalar_lea.vmem %s937_s0, %s787_s24  ;;  %v773_v5 = vld [vmem:[%s939_s2] ss:$0 sm:$0xff]  ;;  %v250_v10 = vshrl.u32 %v249_v4, 7  ;;  %s224_s13 = scalar_lea.vmem %s942_s5, %s787_s24 }
   0xe   : > { %811 = vmatprep.subr.mxu0 %v849_v1  ;;  %807 = vmatpush3.msra.mxu1 %v257_v2  ;;  %v227_v6 = vld [vmem:[%s219_s29] sm:$0xff]  ;;  %v774_v7 = vld [vmem:[%s219_s29 + $0x8] sm:$0xff] }
   0xf   : > { %808 = vmatprep.mubr.msk.f32.mxu1 %vm850_vm0, %v849_v1  ;;  %816 = vmatprep.subr.mxu1 %v849_v1  ;;  %v234_v8 = vmul.f32 %v772_v3, %v227_v6  ;;  %v245_v9 = vmul.f32 %v774_v7, %v772_v3  ;;  %vm251_vm2 = vcmp.eq.s32.totalorder %v250_v10, 0  ;;  %vm254_vm3 = vcmp.eq.s32.totalorder %v250_v10, 7  ;;  %v780_v25 = vld [vmem:[%s941_s4] ss:$0 sm:$0xff] }
  0x11   : > { %v241_v11 = vadd.f32 %v773_v5, %v234_v8  ;;  %v246_v12 = vadd.f32 %v773_v5, %v245_v9 }
  0x13   : > { %v242_v13 = vmax.f32 %v241_v11, 0.0  ;;  %v247_v15 = vmax.f32 %v246_v12, 0.0 }
  0x15   : > { %804 = vmatmul.mubr.msk.f32.vlgmr.msra.gmra.mxu0 %vm260_vm1, %v242_v13  ;;  %v248_v16 = vrot.slane %v247_v15, 7  ;;  %v253_v18 = vrot.slane %v242_v13, 1 }
  0x16   : > { %812 = vmatpush3.msra.mxu0 %v778_v14  ;;  %813 = vmatprep.mubr.msk.f32.mxu0 %vm850_vm0, %v849_v1 }
  0x17   : > { %v252_v17 = vsel %vm251_vm2, 0.0, %v248_v16  ;;  %821 = vmatprep.subr.mxu0 %v849_v1  ;;  %v255_v19 = vsel %vm254_vm3, 0.0, %v253_v18 }
  0x18   : > { %809 = vmatmul.mubr.msk.f32.vlgmr.msra.gmra.mxu1 %vm260_vm1, %v252_v17 }
  0x19   : > { %817 = vmatpush3.msra.mxu1 %v775_v0  ;;  %814 = vmatmul.mubr.msk.f32.vlgmr.msra.gmra.mxu0 %vm260_vm1, %v247_v15 }
  0x1a   : > { %822 = vmatpush3.msra.mxu0 %v257_v2  ;;  %818 = vmatprep.mubr.msk.f32.mxu1 %vm850_vm0, %v849_v1 }
  0x1b   : > { %826 = vmatprep.subr.mxu1 %v849_v1  ;;  %823 = vmatprep.mubr.msk.f32.mxu0 %vm850_vm0, %v849_v1 }
  0x1c   : > { %819 = vmatmul.mubr.msk.f32.vlgmr.msra.gmra.mxu1 %vm260_vm1, %v247_v15 }
  0x1d   : > { %827 = vmatpush3.msra.mxu1 %v778_v14  ;;  %824 = vmatmul.mubr.msk.f32.vlgmr.msra.gmra.mxu0 %vm260_vm1, %v242_v13 }
  0x1e   : > { %828 = vmatprep.mubr.msk.f32.mxu1 %vm850_vm0, %v849_v1 }
  0x20   : > { %829 = vmatmul.mubr.msk.f32.vlgmr.msra.gmra.mxu1 %vm260_vm1, %v255_v19 }
  0xd5   : > { %v330_v20 = vpop.f32.mrf.mxu0 }
  0xd7   : > { %v805_v21 = vpop.f32.mrf.mxu0 }
  0xd8   : > { %v403_v22 = vpop.f32.mrf.mxu1 }
  0xd9   : > { %v404_v23 = vadd.f32 %v403_v22, %v330_v20  ;;  %v478_v24 = vpop.f32.mrf.mxu0 }
  0xda   : > { %v810_v26 = vpop.f32.mrf.mxu1 }
  0xdb   : > { %v482_v27 = vadd.f32 %v478_v24, %v404_v23  ;;  %v815_v28 = vpop.f32.mrf.mxu0 }
  0xdc   : > { %v556_v29 = vpop.f32.mrf.mxu1 }
  0xdd   : > { %v489_v30 = vadd.f32 %v780_v25, %v482_v27  ;;  %v626_v31 = vpop.f32.mrf.mxu0 }
  0xde   : > { %v627_v32 = vadd.f32 %v626_v31, %v556_v29  ;;  %v820_v33 = vpop.f32.mrf.mxu1 }
  0xdf   : > { %705 = vst.msk [vmem:[%s224_s13] sm:$0xff] %vm260_vm1, %v489_v30  ;;  %v825_v34 = vpop.f32.mrf.mxu0 }
  0xe0   : > { %v699_v35 = vpop.f32.mrf.mxu1 }
  0xe1   : > { %v703_v36 = vadd.f32 %v699_v35, %v627_v32 }
  0xe2   : > { %v830_v37 = vpop.f32.mrf.mxu1 }
  0xe3   : > { %v704_v38 = vadd.f32 %v780_v25, %v703_v36 }
  0xe5   : > { %784 = vst.msk [vmem:[%s224_s13 + $0x8] sm:$0xff] %vm260_vm1, %v704_v38 }
  0xe6 PF: > { %s15_s18 = sadd.s32 1, %s847_s18  }
  0xe7   : > { %p12_p4 = scmp.ge.s32.totalorder %s15_s18, 4  }
  0xe9   :  { %14 = sbr.rel (!%p12_p4) target bundleno = 1 (0x1), region = 74 }

// kernel: up_conv_forward.4
= control target key start
LH: loop header
LB: loop body
LE: loop exit
PB: predicated region body
PF: predicated region fallthrough
CT: control target
= control target key end

     0   :  { %s1597_s17 = smov 0   ;;  %s1727_s0 = inlined_call_operand.vmem [shape: f32[2,2,8,4], index: 0, kind: input, shape index: {}]   ;;  %s1728_s1 = inlined_call_operand.vmem [shape: f32[2,8,4], index: 1, kind: input, shape index: {}]   ;;  %s1729_s2 = inlined_call_operand.vmem [shape: f32[1,4], index: 2, kind: input, shape index: {}]   ;;  %s1730_s3 = inlined_call_operand.vmem [shape: f32[1,4], index: 3, kind: input, shape index: {}]   ;;  %s1731_s4 = inlined_call_operand.vmem [shape: f32[1,4], index: 4, kind: input, shape index: {}]   ;;  %s1732_s5 = inlined_call_operand.vmem [shape: f32[1,4], index: 5, kind: input, shape index: {}]   ;;  %s1733_s6 = inlined_call_operand.vmem [shape: f32[3,4,8], index: 6, kind: input, shape index: {}]   ;;  %s1734_s7 = inlined_call_operand.vmem [shape: f32[4,4,8], index: 7, kind: input, shape index: {}]   ;;  %s1735_s8 = inlined_call_operand.vmem [shape: f32[1,8], index: 8, kind: input, shape index: {}]   ;;  %s1736_s9 = inlined_call_operand.vmem [shape: f32[2,2,8,8], index: 9, kind: output, shape index: {0}]   ;;  %s1737_s10 = inlined_call_operand.vmem [shape: f32[2,1,8], index: 10, kind: output, shape index: {1}]   ;;  %s1738_s11 = inlined_call_operand.vmem [shape: f32[2,1,8], index: 11, kind: output, shape index: {2}]  }
   0x1 LB: > { %s1401_s18 = sadd.s32 4294967295, %s1533_s17   ;;  %p1405_p0 = scmp.ge.s32.totalorder %s1533_s17, 1  ;;  %s1533_s17 = sphi %s1597_s17, %s22_s17  }
   0x2   : > { %p351_p1 = scmp.lt.s32.totalorder %s1533_s17, 3 }
   0x4   : > { %p352_p2 = pnand %p1405_p0, %p351_p1 }
   0x5   : > { %p401_p3 = scmp.lt.s32.totalorder (!%p352_p2), %s1401_s18, 1 }
   0x6   : > { %355 = sbr.rel (%p352_p2) target bundleno = 257 (0x101), region = 56 }
   0xb   : > { %v1416_v0 = vld [vmem:[%s1733_s6 + $0x4] sm:$0xf]  ;;  %vm482_vm0 = vcmask 1043456   ;;  %v1535_v1 = vmov 0.0   ;;  %vm1536_vm1 = vmmov 0   ;;  %s1740_s18 = smov (!%p401_p3, %s1401_s18), 1  ;;  %v463_v5 = vlaneseq }
   0xc   : > { %1467 = vmatprep.subr.mxu0 %v1535_v1  ;;  %1469 = vmatprep.mubr.msk.f32.mxu0 %vm1536_vm1, %v1535_v1  ;;  %v475_v2 = vld [vmem:[%s1733_s6] sm:$0xf]  ;;  %s1445_s23 = sshll.u32 %s1740_s18, 4  ;;  %s1408_s26 = sshll.u32 %s1740_s18, 3  ;;  %vm478_vm2 = vcmask 31744   ;;  %vm1245_vm5 = vcmask 64512  }
   0xd   : > { %1468 = vmatpush3.msk.msra.mxu0 %vm482_vm0, %v1416_v0  ;;  %1472 = vmatprep.subr.mxu1 %v1535_v1  ;;  %v1411_v3 = vld [vmem:[%s1729_s2] ss:$0 sm:$0xff]  ;;  %s405_s12 = scalar_lea.vmem %s1727_s0, %s1445_s23  ;;  %s409_s19 = scalar_lea.vmem %s1728_s1, %s1408_s26  ;;  %v464_v14 = vshrl.u32 %v463_v5, 7  ;;  %v1421_v19 = vld [vmem:[%s1733_s6 + $0x8] sm:$0xf]  ;;  %vm1264_vm6 = vcmask 57344  }
   0xe   : > { %1477 = vmatprep.subr.mxu0 %v1535_v1  ;;  %1473 = vmatpush3.msk.msra.mxu1 %vm482_vm0, %v475_v2  ;;  %v1414_v4 = vld [vmem:[%s1731_s4] ss:$0 sm:$0xff]  ;;  %v1413_v9 = vld [vmem:[%s405_s12 + $0x8] sm:$0xff]  ;;  %v1426_v26 = vld [vmem:[%s1734_s7 + $0x4] sm:$0xf]  ;;  %s414_s20 = scalar_lea.vmem %s1736_s9, %s1445_s23  ;;  %s417_s22 = scalar_lea.vmem %s1737_s10, %s1740_s18 }
   0xf   : > { %1474 = vmatprep.mubr.msk.f32.mxu1 %vm1536_vm1, %v1535_v1  ;;  %1482 = vmatprep.subr.mxu1 %v1535_v1  ;;  %v1412_v6 = vld [vmem:[%s1730_s3] ss:$0 sm:$0xff]  ;;  %v443_v12 = vmul.f32 %v1413_v9, %v1411_v3  ;;  %vm465_vm3 = vcmp.eq.s32.totalorder %v464_v14, 0  ;;  %vm468_vm4 = vcmp.eq.s32.totalorder %v464_v14, 7  ;;  %v1436_v29 = vld [vmem:[%s1734_s7 + $0x8] sm:$0xf]  ;;  %s420_s26 = scalar_lea.vmem %s1738_s11, %s1740_s18 }
  0x10   : > { %v1415_v7 = vld [vmem:[%s1732_s5] ss:$0 sm:$0xff]  ;;  %v1439_v32 = vld [vmem:[%s1734_s7 + $0xc] sm:$0xf] }
  0x11   : > { %v425_v8 = vld [vmem:[%s405_s12] sm:$0xff]  ;;  %v444_v16 = vadd.f32 %v1412_v6, %v443_v12 }
  0x12   : > { %v446_v10 = vld [vmem:[%s409_s19] sm:$0xff]  ;;  %v432_v11 = vmul.f32 %v1411_v3, %v425_v8 }
  0x13   : > { %v453_v13 = vmul.f32 %v1414_v4, %v446_v10  ;;  %v445_v20 = vmax.f32 %v444_v16, 0.0  ;;  %v711_v24 = vld [vmem:[%s1734_s7] sm:$0xf] }
  0x14   : > { %v439_v15 = vadd.f32 %v1412_v6, %v432_v11  ;;  %v1429_v45 = vld [vmem:[%s1735_s8] ss:$0 sm:$0xff] }
  0x15   : > { %v460_v17 = vadd.f32 %v1415_v7, %v453_v13  ;;  %v462_v22 = vrot.slane %v445_v20, 7 }
  0x16   : > { %v440_v18 = vmax.f32 %v439_v15, 0.0 }
  0x17   : > { %v461_v21 = vmax.f32 %v460_v17, 0.0  ;;  %v466_v25 = vsel %vm465_vm3, 0.0, %v462_v22 }
  0x18   : > { %1470 = vmatmul.mubr.msk.f32.vlgmr.msra.gmra.mxu0 %vm478_vm2, %v440_v18  ;;  %1475 = vmatmul.mubr.msk.f32.vlgmr.msra.gmra.mxu1 %vm478_vm2, %v466_v25  ;;  %v467_v28 = vrot.slane %v440_v18, 1 }
  0x19   : > { %v470_v23 = vrot.slane %v461_v21, 7  ;;  %1478 = vmatpush3.msk.msra.mxu0 %vm482_vm0, %v1421_v19  ;;  %1479 = vmatprep.mubr.msk.f32.mxu0 %vm1536_vm1, %v1535_v1  ;;  %v472_v31 = vrot.slane %v461_v21, 1 }
  0x1a   : > { %1487 = vmatprep.subr.mxu0 %v1535_v1  ;;  %1483 = vmatpush3.msk.msra.mxu1 %vm482_vm0, %v711_v24  ;;  %v469_v30 = vsel %vm468_vm4, 0.0, %v467_v28 }
  0x1b   : > { %v471_v27 = vsel %vm465_vm3, 0.0, %v470_v23  ;;  %1484 = vmatprep.mubr.msk.f32.mxu1 %vm1536_vm1, %v1535_v1  ;;  %1492 = vmatprep.subr.mxu1 %v1535_v1  ;;  %v473_v33 = vsel %vm468_vm4, 0.0, %v472_v31 }
  0x1c   : > { %1480 = vmatmul.mubr.msk.f32.vlgmr.msra.gmra.mxu0 %vm478_vm2, %v445_v20  ;;  %1485 = vmatmul.mubr.msk.f32.vlgmr.msra.gmra.mxu1 %vm478_vm2, %v471_v27 }
  0x1d   : > { %1488 = vmatpush3.msk.msra.mxu0 %vm482_vm0, %v1426_v26  ;;  %1489 = vmatprep.mubr.msk.f32.mxu0 %vm1536_vm1, %v1535_v1 }
  0x1e   : > { %1497 = vmatprep.subr.mxu0 %v1535_v1  ;;  %1493 = vmatpush3.msk.msra.mxu1 %vm482_vm0, %v1416_v0 }
  0x1f   : > { %1494 = vmatprep.mubr.msk.f32.mxu1 %vm1536_vm1, %v1535_v1  ;;  %1502 = vmatprep.subr.mxu1 %v1535_v1 }
  0x20   : > { %1490 = vmatmul.mubr.msk.f32.vlgmr.msra.gmra.mxu0 %vm478_vm2, %v461_v21  ;;  %1495 = vmatmul.mubr.msk.f32.vlgmr.msra.gmra.mxu1 %vm478_vm2, %v445_v20 }
  0x21   : > { %1498 = vmatpush3.msk.msra.mxu0 %vm482_vm0, %v475_v2  ;;  %1499 = vmatprep.mubr.msk.f32.mxu0 %vm1536_vm1, %v1535_v1 }
  0x22   : > { %1507 = vmatprep.subr.mxu0 %v1535_v1  ;;  %1503 = vmatpush3.msk.msra.mxu1 %vm482_vm0, %v1421_v19 }
  0x23   : > { %1504 = vmatprep.mubr.msk.f32.mxu1 %vm1536_vm1, %v1535_v1  ;;  %1512 = vmatprep.subr.mxu1 %v1535_v1 }
  0x24   : > { %1500 = vmatmul.mubr.msk.f32.vlgmr.msra.gmra.mxu0 %vm478_vm2, %v440_v18  ;;  %1505 = vmatmul.mubr.msk.f32.vlgmr.msra.gmra.mxu1 %vm478_vm2, %v469_v30 }
  0x25   : > { %1508 = vmatpush3.msk.msra.mxu0 %vm482_vm0, %v1436_v29  ;;  %1509 = vmatprep.mubr.msk.f32.mxu0 %vm1536_vm1, %v1535_v1 }
  0x26   : > { %1513 = vmatpush3.msk.msra.mxu1 %vm482_vm0, %v1439_v32  ;;  %1514 = vmatprep.mubr.msk.f32.mxu1 %vm1536_vm1, %v1535_v1 }
  0x28   : > { %1510 = vmatmul.mubr.msk.f32.vlgmr.msra.gmra.mxu0 %vm478_vm2, %v461_v21  ;;  %1515 = vmatmul.mubr.msk.f32.vlgmr.msra.gmra.mxu1 %vm478_vm2, %v473_v33 }
  0xd8   : > { %v552_v34 = vpop.f32.mrf.mxu0  ;;  %v628_v36 = vpop.f32.mrf.mxu1 }
  0xd9   : > { %v629_v37 = vadd.f32 %v628_v36, %v552_v34 }
  0xda   : > { %v1471_v35 = vpop.f32.mrf.mxu0  ;;  %v1476_v39 = vpop.f32.mrf.mxu1 }
  0xdc   : > { %v706_v38 = vpop.f32.mrf.mxu0  ;;  %v784_v42 = vpop.f32.mrf.mxu1 }
  0xdd   : > { %v710_v40 = vadd.f32 %v706_v38, %v629_v37 }
  0xde   : > { %v1481_v41 = vpop.f32.mrf.mxu0  ;;  %v1486_v46 = vpop.f32.mrf.mxu1 }
  0xdf   : > { %v788_v43 = vadd.f32 %v784_v42, %v710_v40 }
  0xe0   : > { %v863_v44 = vpop.f32.mrf.mxu0  ;;  %v941_v49 = vpop.f32.mrf.mxu1 }
  0xe1   : > { %v867_v47 = vadd.f32 %v863_v44, %v788_v43 }
  0xe2   : > { %v1491_v48 = vpop.f32.mrf.mxu0  ;;  %v1496_v53 = vpop.f32.mrf.mxu1 }
  0xe3   : > { %v874_v50 = vadd.f32 %v1429_v45, %v867_v47 }
  0xe4   : > { %v1011_v51 = vpop.f32.mrf.mxu0  ;;  %v1084_v58 = vpop.f32.mrf.mxu1 }
  0xe5   : > { %v1012_v52 = vadd.f32 %v1011_v51, %v941_v49  ;;  %1246 = vst.msk [vmem:[%s414_s20] sm:$0xff] %vm1245_vm5, %v874_v50  ;;  %v1249_v54 = vsel %vm1245_vm5, %v874_v50, 0.0  ;;  %v1266_v55 = vmul.f32 %v874_v50, %v874_v50 }
  0xe6   : > { %v1501_v56 = vpop.f32.mrf.mxu0  ;;  %v1250_v57 = vrot.slane %v1249_v54, 4  ;;  %v1506_v63 = vpop.f32.mrf.mxu1 }
  0xe7   : > { %v1267_v59 = vsel %vm1245_vm5, %v1266_v55, 0.0  ;;  %v1088_v60 = vadd.f32 %v1084_v58, %v1012_v52 }
  0xe8   : > { %v1160_v61 = vpop.f32.mrf.mxu0  ;;  %v1268_v62 = vrot.slane %v1267_v59, 4  ;;  %v1251_v2 = vadd.f32 %v1250_v57, %v1249_v54  ;;  %v1239_v3 = vpop.f32.mrf.mxu1 }
  0xe9   : > { %v1164_v0 = vadd.f32 %v1160_v61, %v1088_v60 }
  0xea   : > { %v1511_v1 = vpop.f32.mrf.mxu0  ;;  %v1269_v5 = vadd.f32 %v1268_v62, %v1267_v59  ;;  %v1516_v6 = vpop.f32.mrf.mxu1  ;;  %v1252_v8 = vrot.slane %v1251_v2, 2 }
  0xeb   : > { %v1243_v4 = vadd.f32 %v1239_v3, %v1164_v0 }
  0xec   : > { %v1270_v11 = vrot.slane %v1269_v5, 2  ;;  %v1253_v14 = vadd.f32 %v1252_v8, %v1251_v2 }
  0xed   : > { %v1244_v7 = vadd.f32 %v1429_v45, %v1243_v4 }
  0xee   : > { %v1271_v17 = vadd.f32 %v1270_v11, %v1269_v5  ;;  %v1254_v20 = vrot.slane %v1253_v14, 1 }
  0xef   : > { %1442 = vst.msk [vmem:[%s414_s20 + $0x8] sm:$0xff] %vm1245_vm5, %v1244_v7  ;;  %v1256_v9 = vsel %vm1245_vm5, %v1244_v7, 0.0  ;;  %v1274_v10 = vmul.f32 %v1244_v7, %v1244_v7 }
  0xf0   : > { %v1257_v12 = vrot.slane %v1256_v9, 4  ;;  %v1272_v23 = vrot.slane %v1271_v17, 1  ;;  %v1255_v26 = vadd.f32 %v1254_v20, %v1253_v14 }
  0xf1   : > { %v1275_v13 = vsel %vm1245_vm5, %v1274_v10, 0.0 }
  0xf2   : > { %v1258_v15 = vadd.f32 %v1257_v12, %v1256_v9  ;;  %v1276_v16 = vrot.slane %v1275_v13, 4  ;;  %v1273_v29 = vadd.f32 %v1272_v23, %v1271_v17 }
  0xf4   : > { %v1259_v18 = vrot.slane %v1258_v15, 2  ;;  %v1277_v19 = vadd.f32 %v1276_v16, %v1275_v13 }
  0xf6   : > { %v1260_v21 = vadd.f32 %v1259_v18, %v1258_v15  ;;  %v1278_v22 = vrot.slane %v1277_v19, 2 }
  0xf8   : > { %v1261_v24 = vrot.slane %v1260_v21, 1  ;;  %v1279_v25 = vadd.f32 %v1278_v22, %v1277_v19 }
  0xfa   : > { %v1262_v27 = vadd.f32 %v1261_v24, %v1260_v21  ;;  %v1280_v28 = vrot.slane %v1279_v25, 1 }
  0xfc   : > { %v1263_v30 = vadd.f32 %v1262_v27, %v1255_v26  ;;  %v1281_v31 = vadd.f32 %v1280_v28, %v1279_v25 }
  0xfe   : > { %1265 = vst.msk [vmem:[%s417_s22] sm:$0x1] %vm1264_vm6, %v1263_v30  ;;  %v1282_v32 = vadd.f32 %v1281_v31, %v1273_v29 }
 0x100   : > { %1283 = vst.msk [vmem:[%s420_s26] sm:$0x1] %vm1264_vm6, %v1282_v32 }
 0x101 PF: > { %s22_s17 = sadd.s32 1, %s1533_s17  }
 0x102   : > { %p19_p4 = scmp.ge.s32.totalorder %s22_s17, 4  }
 0x104   :  { %21 = sbr.rel (!%p19_p4) target bundleno = 1 (0x1), region = 120 }

</bundles_post_ra>
